<compile_context>
chip_gen: v6e
topology: v6e:2x2x1
jax: 0.10.0
libtpu: 0.0.40
codegen_flags: <defaults>
</compile_context>

<pallas_src>
import jax
import jax.numpy as jnp
from jax.experimental import pallas as pl
from jax.experimental.pallas import tpu as pltpu


def _cdiv(a: int, b: int) -> int:
    return (a + b - 1) // b


def _layernorm_kernel(x_ref, w_ref, b_ref, o_ref):
    """Fused bias+scale LayerNorm over the last dim of a (bm, C) tile.

    x_ref: (bm, C) VMEM
    w_ref: (1,  C) VMEM   (broadcast scale)
    b_ref: (1,  C) VMEM   (broadcast bias)
    o_ref: (bm, C) VMEM
    """
    x = x_ref[...].astype(jnp.float32)                       # (bm, C)
    mu = jnp.mean(x, axis=-1, keepdims=True)                 # (bm, 1)  XLU reduce
    xc = x - mu
    var = jnp.mean(xc * xc, axis=-1, keepdims=True)          # unbiased=False
    inv = jax.lax.rsqrt(var + 1e-5)                          # EUP
    w = w_ref[...].astype(jnp.float32)                       # (1, C)
    b = b_ref[...].astype(jnp.float32)                       # (1, C)
    o_ref[...] = (xc * inv * w + b).astype(o_ref.dtype)


def withbias_layernorm(x, weight, bias, *, block_rows: int = 256):
    """LayerNorm over the last dim of `x` with scale `weight` and bias `bias`.

    x:      (..., C)
    weight: (C,)
    bias:   (C,)
    returns (..., C) with the same dtype as x.
    """
    orig_shape = x.shape
    C = orig_shape[-1]
    x2 = x.reshape(-1, C)                                    # (M, C)
    M = x2.shape[0]

    # Row-tile size: multiple of 8 (sublane), capped by the (padded) row count.
    bm = min(block_rows, _cdiv(M, 8) * 8)
    M_pad = _cdiv(M, bm) * bm
    if M_pad != M:
        # Padded rows are all-zero; they normalize to `bias` and are sliced off.
        x2 = jnp.pad(x2, ((0, M_pad - M), (0, 0)))

    w2 = weight.reshape(1, C)
    b2 = bias.reshape(1, C)

    out = pl.pallas_call(
        _layernorm_kernel,
        out_shape=jax.ShapeDtypeStruct((M_pad, C), x.dtype),
        grid_spec=pltpu.PrefetchScalarGridSpec(
            num_scalar_prefetch=0,
            grid=(M_pad // bm,),
            in_specs=[
                pl.BlockSpec((bm, C), lambda i: (i, 0)),     # x rows tile
                pl.BlockSpec((1, C), lambda i: (0, 0)),      # weight (resident)
                pl.BlockSpec((1, C), lambda i: (0, 0)),      # bias   (resident)
            ],
            out_specs=pl.BlockSpec((bm, C), lambda i: (i, 0)),
        ),
        compiler_params=pltpu.CompilerParams(
            dimension_semantics=("parallel",)),
    )(x2, w2, b2)

    if M_pad != M:
        out = out[:M]
    return out.reshape(orig_shape)


def _reference(x, weight, bias, eps=1e-5):
    """Pure-JAX reference matching the PyTorch forward (unbiased=False var)."""
    x32 = x.astype(jnp.float32)
    mu = jnp.mean(x32, axis=-1, keepdims=True)
    var = jnp.mean((x32 - mu) ** 2, axis=-1, keepdims=True)
    y = (x32 - mu) / jnp.sqrt(var + eps) * weight + bias
    return y.astype(x.dtype)


if __name__ == "__main__":
    # Shapes consistent with how WithBias_LayerNorm is used in refine_tf.py:
    # a (B, H*W, C) tensor normalized over the channel dim C.
    B, HW, C = 2, 256, 128   # e.g. H=W=16 spatial, 128 channels (lane-dense)

    key = jax.random.PRNGKey(0)
    kx, kw, kb = jax.random.split(key, 3)

    x = jax.random.normal(kx, (B, HW, C), dtype=jnp.float32)
    # nn.Parameter init is ones/zeros; perturb slightly so scale/bias are exercised.
    weight = jnp.ones((C,), jnp.float32) + 0.1 * jax.random.normal(kw, (C,), jnp.float32)
    bias = 0.1 * jax.random.normal(kb, (C,), jnp.float32)

    out = jax.jit(withbias_layernorm)(x, weight, bias)
    out = jax.block_until_ready(out)

    assert out.shape == x.shape, out.shape

    ref = _reference(x, weight, bias)
    assert jnp.allclose(out, ref, atol=1e-5, rtol=1e-5), "mismatch vs reference"

    print("KERNEL_OK")
</pallas_src>

<mosaic_0001>
module attributes {stable_mosaic.version = 11 : i64} {
  func.func @_layernorm_kernel(%arg0: i32, %arg1: memref<256x128xf32, #tpu.memory_space<vmem>>, %arg2: memref<1x128xf32, #tpu.memory_space<vmem>>, %arg3: memref<1x128xf32, #tpu.memory_space<vmem>>, %arg4: memref<256x128xf32, #tpu.memory_space<vmem>>) attributes {dimension_semantics = [#tpu.dimension_semantics<parallel>], iteration_bounds = array<i64: 2>, scalar_prefetch = 0 : i64, scratch_operands = 0 : i64, tpu.core_type = #tpu.core_type<tc>, window_params = [{transform_indices = @transform_0, window_bounds = array<i64: 256, 128>}, {pipeline_mode = #tpu.pipeline_mode<synchronous>, transform_indices = @transform_1, window_bounds = array<i64: 1, 128>}, {pipeline_mode = #tpu.pipeline_mode<synchronous>, transform_indices = @transform_2, window_bounds = array<i64: 1, 128>}, {transform_indices = @transform_3, window_bounds = array<i64: 256, 128>}]} {
    %c0 = arith.constant 0 : index
    %c0_0 = arith.constant 0 : index
    %0 = vector.load %arg1[%c0, %c0_0] : memref<256x128xf32, #tpu.memory_space<vmem>>, vector<256x128xf32>
    %cst = arith.constant dense<0.000000e+00> : vector<256xf32>
    %1 = vector.multi_reduction <add>, %0, %cst [1] : vector<256x128xf32> to vector<256xf32>
    %2 = vector.shape_cast %1 : vector<256xf32> to vector<256x1xf32>
    %cst_1 = arith.constant 1.280000e+02 : f32
    %3 = vector.broadcast %cst_1 : f32 to vector<256x1xf32>
    %4 = arith.divf %2, %3 : vector<256x1xf32>
    %5 = vector.broadcast %4 : vector<256x1xf32> to vector<256x128xf32>
    %6 = arith.subf %0, %5 : vector<256x128xf32>
    %7 = arith.mulf %6, %6 : vector<256x128xf32>
    %cst_2 = arith.constant dense<0.000000e+00> : vector<256xf32>
    %8 = vector.multi_reduction <add>, %7, %cst_2 [1] : vector<256x128xf32> to vector<256xf32>
    %9 = vector.shape_cast %8 : vector<256xf32> to vector<256x1xf32>
    %cst_3 = arith.constant 1.280000e+02 : f32
    %10 = vector.broadcast %cst_3 : f32 to vector<256x1xf32>
    %11 = arith.divf %9, %10 : vector<256x1xf32>
    %cst_4 = arith.constant 9.99999974E-6 : f32
    %12 = vector.broadcast %cst_4 : f32 to vector<256x1xf32>
    %13 = arith.addf %11, %12 : vector<256x1xf32>
    %14 = math.rsqrt %13 : vector<256x1xf32>
    %c0_5 = arith.constant 0 : index
    %c0_6 = arith.constant 0 : index
    %15 = vector.load %arg2[%c0_5, %c0_6] : memref<1x128xf32, #tpu.memory_space<vmem>>, vector<1x128xf32>
    %c0_7 = arith.constant 0 : index
    %c0_8 = arith.constant 0 : index
    %16 = vector.load %arg3[%c0_7, %c0_8] : memref<1x128xf32, #tpu.memory_space<vmem>>, vector<1x128xf32>
    %17 = vector.broadcast %14 : vector<256x1xf32> to vector<256x128xf32>
    %18 = arith.mulf %6, %17 : vector<256x128xf32>
    %19 = vector.broadcast %15 : vector<1x128xf32> to vector<256x128xf32>
    %20 = arith.mulf %18, %19 : vector<256x128xf32>
    %21 = vector.broadcast %16 : vector<1x128xf32> to vector<256x128xf32>
    %22 = arith.addf %20, %21 : vector<256x128xf32>
    %c0_9 = arith.constant 0 : index
    %c0_10 = arith.constant 0 : index
    %23 = vector.load %arg4[%c0_9, %c0_10] : memref<256x128xf32, #tpu.memory_space<vmem>>, vector<256x128xf32>
    tpu.vector_store %arg4[%c0_9, %c0_10], %22 {strides = array<i32>} : memref<256x128xf32, #tpu.memory_space<vmem>>, vector<256x128xf32>,
    return
  }
  func.func @transform_0(%arg0: i32) -> (i32, i32) {
    %c0_i32 = arith.constant 0 : i32
    %c0_i32_0 = arith.constant 0 : i32
    return %arg0, %c0_i32 : i32, i32
  }
  func.func @transform_1(%arg0: i32) -> (i32, i32) {
    %c0_i32 = arith.constant 0 : i32
    %c0_i32_0 = arith.constant 0 : i32
    %c0_i32_1 = arith.constant 0 : i32
    return %c0_i32, %c0_i32_0 : i32, i32
  }
  func.func @transform_2(%arg0: i32) -> (i32, i32) {
    %c0_i32 = arith.constant 0 : i32
    %c0_i32_0 = arith.constant 0 : i32
    %c0_i32_1 = arith.constant 0 : i32
    return %c0_i32, %c0_i32_0 : i32, i32
  }
  func.func @transform_3(%arg0: i32) -> (i32, i32) {
    %c0_i32 = arith.constant 0 : i32
    %c0_i32_0 = arith.constant 0 : i32
    return %arg0, %c0_i32 : i32, i32
  }
}

</mosaic_0001>

<bundles_post_ra>
// kernel: withbias_layernorm.1
= control target key start
LH: loop header
LB: loop body
LE: loop exit
PB: predicated region body
PF: predicated region fallthrough
CT: control target
= control target key end

     0   :  { %8 = vsyncpa [#allocation3], 0  ;;  %s1614_s0 = inlined_call_operand.hbm [shape: f32[512,128], index: 0, kind: input, shape index: {}]   ;;  %s1615_s1 = inlined_call_operand.vmem [shape: f32[1,128], index: 1, kind: input, shape index: {}]   ;;  %s1616_s2 = inlined_call_operand.vmem [shape: f32[1,128], index: 2, kind: input, shape index: {}]   ;;  %s1617_s3 = inlined_call_operand.hbm [shape: f32[512,128], index: 3, kind: output, shape index: {}]  }
   0x1   :  { %10 = vsyncpa [#allocation3 + $0x1], 0 }
   0x2   :  { %11 = vsyncpa [#allocation4], 0 }
   0x3   :  { %13 = vsyncpa [#allocation4 + $0x1], 0  ;;  %s1025_s12 = smov 0   ;;  %s1027_s13 = smov 0  }
   0x4   :  { %s1029_s14 = smov 0   ;;  %s1031_s15 = smov 0  }
   0x5 LB: > { %s1046_s16 = sadd.s32 4294967295, %s997_s15   ;;  %s773_s17 = sadd.s32 4294967294, %s997_s15   ;;  %s997_s15 = sphi %s1031_s15, %s1632_s15   ;;  %s993_s14 = sphi %s1029_s14, %s1631_s14   ;;  %s989_s13 = sphi %s1027_s13, %s1630_s13   ;;  %s985_s12 = sphi %s1025_s12, %s1629_s12  }
   0x6   : > { %s1050_s18 = sadd.s32 1, %s997_s15   ;;  %s26_s19 = sadd.s32 1, %s993_s14 }
   0x7   : > { %s23_s20 = ssub.s32 %s997_s15, %s1050_s18  ;;  %p33_p0 = scmp.ne.s32.totalorder %s993_s14, %s989_s13 }
   0x8   : > { %p24_p1 = scmp.eq.s32.totalorder %s23_s20, 0  ;;  %p34_p2 = scmp.eq.s32.totalorder %s997_s15, 0 }
   0x9   : > { %p39_p3 = scmp.ne.s32.totalorder %s989_s13, %s985_s12  ;;  %p40_p4 = scmp.eq.s32.totalorder %s1046_s16, 0 }
   0xa   : > { %s1062_s21 = scalar_select %p24_p1, %s993_s14, %s26_s19  }
   0xb   : > { %p1064_p5 = por %p34_p2, %p33_p0  ;;  %p1068_p6 = por %p40_p4, %p39_p3 }
   0xc   : > { %p105_p7 = scmp.eq.s32.totalorder %s1046_s16, 1  ;;  %p111_p8 = scmp.eq.s32.totalorder %s773_s17, 1 }
   0xd   : > { %s1621_s23 = scalar_select %p1068_p6, 1, 0 }
   0xe   : > { %p803_p10 = scmp.lt.s32.totalorder %s997_s15, 2  ;;  %p1075_p11 = por %p105_p7, %p33_p0 }
   0xf   : > { %p1079_p12 = por %p111_p8, %p39_p3  ;;  %s137_s26 = sand.u32 1, %s993_s14  }
  0x10   : > { %s1622_s24 = scalar_select %p1075_p11, 1, 0 }
  0x11   : > { %s1623_s25 = scalar_select %p1079_p12, 1, 0 }
  0x12   : > { %s789_s27 = sshll.u32 %s997_s15, 12  ;;  %s776_s28 = sshll.u32 %s137_s26, 8 }
  0x13   : > { %s1088_s4 = scalar_lea.hbm %s1614_s0, %s789_s27  ;;  %s141_s5 = scalar_lea.vmem [#allocation2], %s776_s28 }
  0x14   : > { %s148_s6 = sshll.u32 %s141_s5, 4  ;;  %p1092_p13 = pnand %p803_p10, %p1064_p5  ;;  %s1096_s6 = int_to_ptr.vmem [resolvable:$true] %s148_s6 }
  0x15   : > { %s1098_s8 = scalar_lea.sflag [#allocation3], %s137_s26  ;;  %s905_s9 = scalar_lea.hbm %s1088_s4, 4096 }
  0x16   : > { %p906_p0 = scmp.ne.s32.totalorder %s1088_s4, %s905_s9  ;;  %p907_p1 = pneg %p1092_p13 }
  0x17   : > { %s910_s17 = scalar_lea.hbm %s1614_s0, 8192  ;;  %p911_p4 = scmp.lt.s32.totalorder %s1088_s4, %s1614_s0 }
  0x18   : > { %p908_p2 = pnand %p907_p1, %p906_p0  ;;  %p912_p5 = scmp.lt.s32.totalorder %s910_s17, %s905_s9 }
  0x1a   : > { %p909_p3 = pneg %p908_p2  ;;  %p913_p7 = por %p912_p5, %p911_p4 }
  0x1c   : > { %p914_p8 = pnand %p913_p7, %p909_p3 }
  0x1e   : > { %917 = shalt.err (!%p914_p8)
}
  0x1f   : > { %s918_s22 = scalar_lea.vmem %s1096_s6, 4096  ;;  %s999_s26 = smov [#allocation2]  }
  0x20   : > { %p919_p10 = scmp.ne.s32.totalorder %s1096_s6, %s918_s22  ;;  %s923_s27 = sshll.u32 %s999_s26, 4  ;;  %s924_s27 = int_to_ptr.vmem [resolvable:$false] %s923_s27 }
  0x21   : > { %s925_s28 = scalar_lea.vmem %s924_s27, 8192  ;;  %p926_p2 = scmp.lt.s32.totalorder %s1096_s6, %s924_s27 }
  0x22   : > { %p921_p9 = pnand %p919_p10, %p907_p1  ;;  %p927_p12 = scmp.lt.s32.totalorder %s925_s28, %s918_s22 }
  0x24   : > { %p922_p0 = pneg %p921_p9  ;;  %p928_p11 = por %p927_p12, %p926_p2 }
  0x26   : > { %p929_p6 = pnand %p928_p11, %p922_p0 }
  0x28   : > { %932 = shalt.err (!%p929_p6)
}
  0x29   : > { %s1000_s29 = smov 128   ;;  %s1001_s30 = smov 8  }
  0x2a   : > { %798 = dma.hbm_to_vmem [thread:$0]  (!%p1092_p13), %s1088_s4, 4096, %s1096_s6, %s1098_s8, %s1000_s29, %s1000_s29, %s1001_s30  }
  0x2b   : > { %p779_p9 = scmp.ge.s32.totalorder %s997_s15, 1  ;;  %p156_p1 = scmp.lt.s32.totalorder %s997_s15, 3 }
  0x2d   : > { %p157_p3 = pnand %p779_p9, %p156_p1 }
  0x2e   : > { %s1122_s5 = sand.u32 (!%p157_p3), 1, %s989_s13   ;;  %p1625_p6 = scmp.ne.s32.totalorder (!%p157_p3), %s1621_s23, 0 }
  0x2f   : > { %160 = sbr.rel (%p157_p3) target bundleno = 438 (0x1b6), region = 32  ;;  %s780_s9 = sshll.u32 (!%p157_p3), %s1122_s5, 8 }
  0x30   : > { %s163_s10 = scalar_lea.sflag (!%p157_p3), [#allocation3], %s1122_s5  ;;  %s1128_s11 = scalar_lea.vmem (!%p157_p3), [#allocation2], %s780_s9 }
  0x34   : > { %976 = dma.done.wait (%p1625_p6), %s163_s10, 4096  }
  0x35   : > { %978 = vsyncadd (%p1625_p6), %s163_s10, 4294963200  ;;  %v1135_v0 = vld [vmem:[%s1128_s11] sm:$0xff]  ;;  %v1138_v1 = vld [vmem:[%s1128_s11 + $0x10] sm:$0xff]  ;;  %s1439_s8 = scalar_lea.vmem [#allocation5], %s780_s9  ;;  %s790_s17 = sshll.u32 %s1046_s16, 12 }
  0x36   : > { %223 = vadd.xlane.f32.xlu0 %v1135_v0  ;;  %227 = vadd.xlane.f32.xlu1 %v1138_v1  ;;  %v1143_v2 = vld [vmem:[%s1128_s11 + $0x8] sm:$0xff]  ;;  %v1146_v3 = vld [vmem:[%s1128_s11 + $0x18] sm:$0xff]  ;;  %v1151_v4 = vld [vmem:[%s1128_s11 + $0x20] sm:$0xff]  ;;  %s700_s19 = sshll.u32 %s1439_s8, 4  ;;  %s1567_s26 = scalar_lea.hbm %s1617_s3, %s790_s17  ;;  %s1569_s19 = int_to_ptr.vmem [resolvable:$true] %s700_s19 }
  0x37   : > { %v1154_v5 = vld [vmem:[%s1128_s11 + $0x28] sm:$0xff]  ;;  %v1159_v6 = vld [vmem:[%s1128_s11 + $0x30] sm:$0xff]  ;;  %v1162_v7 = vld [vmem:[%s1128_s11 + $0x38] sm:$0xff]  ;;  %s687_s16 = scalar_lea.sflag [#allocation4], %s1122_s5  ;;  %s933_s27 = scalar_lea.vmem %s1569_s19, 4096 }
  0x38   : > { %v1167_v8 = vld [vmem:[%s1128_s11 + $0x40] sm:$0xff]  ;;  %v1170_v9 = vld [vmem:[%s1128_s11 + $0x48] sm:$0xff]  ;;  %v1175_v10 = vld [vmem:[%s1128_s11 + $0x50] sm:$0xff]  ;;  %p934_p11 = scmp.ne.s32.totalorder %s1569_s19, %s933_s27  ;;  %p1626_p12 = scmp.ne.s32.totalorder %s1622_s24, 0 }
  0x39   : > { %v1178_v11 = vld [vmem:[%s1128_s11 + $0x58] sm:$0xff]  ;;  %v1183_v12 = vld [vmem:[%s1128_s11 + $0x60] sm:$0xff]  ;;  %v1186_v13 = vld [vmem:[%s1128_s11 + $0x68] sm:$0xff]  ;;  %s1002_s28 = smov [#allocation5]  }
  0x3a   : > { %225 = vadd.xlane.f32.xlu0 %v1143_v2  ;;  %229 = vadd.xlane.f32.xlu1 %v1146_v3  ;;  %v1191_v14 = vld [vmem:[%s1128_s11 + $0x70] sm:$0xff]  ;;  %v1194_v15 = vld [vmem:[%s1128_s11 + $0x78] sm:$0xff]  ;;  %v1199_v16 = vld [vmem:[%s1128_s11 + $0x80] sm:$0xff]  ;;  %p935_p13 = pnand %p934_p11, %p1626_p12  ;;  %s937_s29 = sshll.u32 %s1002_s28, 4  ;;  %s938_s29 = int_to_ptr.vmem [resolvable:$false] %s937_s29 }
  0x3b   : > { %v1202_v17 = vld [vmem:[%s1128_s11 + $0x88] sm:$0xff]  ;;  %v1207_v18 = vld [vmem:[%s1128_s11 + $0x90] sm:$0xff]  ;;  %v1210_v19 = vld [vmem:[%s1128_s11 + $0x98] sm:$0xff]  ;;  %s939_s30 = scalar_lea.vmem %s938_s29, 8192  ;;  %p940_p5 = scmp.lt.s32.totalorder %s1569_s19, %s938_s29 }
  0x3c   : > { %v1215_v20 = vld [vmem:[%s1128_s11 + $0xa0] sm:$0xff]  ;;  %v1218_v21 = vld [vmem:[%s1128_s11 + $0xa8] sm:$0xff]  ;;  %v1223_v22 = vld [vmem:[%s1128_s11 + $0xb0] sm:$0xff]  ;;  %p936_p4 = pneg %p935_p13  ;;  %p941_p7 = scmp.lt.s32.totalorder %s939_s30, %s933_s27 }
  0x3d   : > { %v1226_v23 = vld [vmem:[%s1128_s11 + $0xb8] sm:$0xff]  ;;  %v1231_v24 = vld [vmem:[%s1128_s11 + $0xc0] sm:$0xff]  ;;  %v1234_v25 = vld [vmem:[%s1128_s11 + $0xc8] sm:$0xff] }
  0x3e   : > { %231 = vadd.xlane.f32.xlu0 %v1151_v4  ;;  %233 = vadd.xlane.f32.xlu1 %v1154_v5  ;;  %v1239_v26 = vld [vmem:[%s1128_s11 + $0xd0] sm:$0xff]  ;;  %v1242_v27 = vld [vmem:[%s1128_s11 + $0xd8] sm:$0xff]  ;;  %v1247_v28 = vld [vmem:[%s1128_s11 + $0xe0] sm:$0xff]  ;;  %p942_p8 = por %p941_p7, %p940_p5 }
  0x3f   : > { %v1250_v29 = vld [vmem:[%s1128_s11 + $0xe8] sm:$0xff]  ;;  %v1255_v30 = vld [vmem:[%s1128_s11 + $0xf0] sm:$0xff]  ;;  %v1258_v31 = vld [vmem:[%s1128_s11 + $0xf8] sm:$0xff] }
  0x40   : > { %p943_p10 = pnand %p942_p8, %p936_p4 }
  0x42   : > { %235 = vadd.xlane.f32.xlu0 %v1159_v6  ;;  %237 = vadd.xlane.f32.xlu1 %v1162_v7 }
  0x46   : > { %239 = vadd.xlane.f32.xlu0 %v1167_v8  ;;  %241 = vadd.xlane.f32.xlu1 %v1170_v9 }
  0x4a   : > { %243 = vadd.xlane.f32.xlu0 %v1175_v10  ;;  %245 = vadd.xlane.f32.xlu1 %v1178_v11 }
  0x4e   : > { %247 = vadd.xlane.f32.xlu0 %v1183_v12  ;;  %249 = vadd.xlane.f32.xlu1 %v1186_v13 }
  0x52   : > { %251 = vadd.xlane.f32.xlu0 %v1191_v14  ;;  %253 = vadd.xlane.f32.xlu1 %v1194_v15 }
  0x56   : > { %255 = vadd.xlane.f32.xlu0 %v1199_v16  ;;  %257 = vadd.xlane.f32.xlu1 %v1202_v17 }
  0x5a   : > { %259 = vadd.xlane.f32.xlu0 %v1207_v18  ;;  %261 = vadd.xlane.f32.xlu1 %v1210_v19 }
  0x5e   : > { %263 = vadd.xlane.f32.xlu0 %v1215_v20  ;;  %265 = vadd.xlane.f32.xlu1 %v1218_v21 }
  0x62   : > { %267 = vadd.xlane.f32.xlu0 %v1223_v22  ;;  %269 = vadd.xlane.f32.xlu1 %v1226_v23 }
  0x66   : > { %271 = vadd.xlane.f32.xlu0 %v1231_v24  ;;  %273 = vadd.xlane.f32.xlu1 %v1234_v25 }
  0x6a   : > { %275 = vadd.xlane.f32.xlu0 %v1239_v26  ;;  %277 = vadd.xlane.f32.xlu1 %v1242_v27 }
  0x6e   : > { %279 = vadd.xlane.f32.xlu0 %v1247_v28  ;;  %281 = vadd.xlane.f32.xlu1 %v1250_v29 }
  0x72   : > { %283 = vadd.xlane.f32.xlu0 %v1255_v30  ;;  %285 = vadd.xlane.f32.xlu1 %v1258_v31 }
  0xbf   : > { %v224_v32 = vpop.xlane.xlu0 %223  ;;  %v228_v33 = vpop.xlane.xlu1 %227 }
  0xc0   : > { %v288_v34 = vmul.f32 0.0078125, %v224_v32  ;;  %v290_v35 = vmul.f32 0.0078125, %v228_v33 }
  0xc2   : > { %v1263_v36 = vsub.f32 %v1135_v0, %v288_v34  ;;  %v1266_v37 = vsub.f32 %v1138_v1, %v290_v35 }
  0xc3   : > { %v226_v38 = vpop.xlane.xlu0 %225  ;;  %v230_v39 = vpop.xlane.xlu1 %229 }
  0xc4   : > { %v289_v40 = vmul.f32 0.0078125, %v226_v38  ;;  %v352_v41 = vmul.f32 %v1263_v36, %v1263_v36  ;;  %v291_v42 = vmul.f32 0.0078125, %v230_v39  ;;  %v354_v45 = vmul.f32 %v1266_v37, %v1266_v37 }
  0xc6   : > { %v1271_v43 = vsub.f32 %v1143_v2, %v289_v40  ;;  %384 = vadd.xlane.f32.xlu0 %v352_v41  ;;  %v1274_v44 = vsub.f32 %v1146_v3, %v291_v42 }
  0xc7   : > { %v232_v46 = vpop.xlane.xlu0 %231  ;;  %v234_v47 = vpop.xlane.xlu1 %233 }
  0xc8   : > { %v292_v48 = vmul.f32 0.0078125, %v232_v46  ;;  %v353_v49 = vmul.f32 %v1271_v43, %v1271_v43  ;;  %v293_v50 = vmul.f32 0.0078125, %v234_v47  ;;  %v355_v53 = vmul.f32 %v1274_v44, %v1274_v44 }
  0xca   : > { %v1281_v51 = vsub.f32 %v1151_v4, %v292_v48  ;;  %388 = vadd.xlane.f32.xlu0 %v354_v45  ;;  %386 = vadd.xlane.f32.xlu1 %v353_v49  ;;  %v1284_v52 = vsub.f32 %v1154_v5, %v293_v50 }
  0xcb   : > { %v236_v54 = vpop.xlane.xlu0 %235  ;;  %v238_v55 = vpop.xlane.xlu1 %237 }
  0xcc   : > { %v294_v56 = vmul.f32 0.0078125, %v236_v54  ;;  %v356_v57 = vmul.f32 %v1281_v51, %v1281_v51  ;;  %v295_v58 = vmul.f32 0.0078125, %v238_v55  ;;  %v357_v61 = vmul.f32 %v1284_v52, %v1284_v52 }
  0xce   : > { %v1291_v59 = vsub.f32 %v1159_v6, %v294_v56  ;;  %390 = vadd.xlane.f32.xlu1 %v355_v53  ;;  %392 = vadd.xlane.f32.xlu0 %v356_v57  ;;  %v1294_v60 = vsub.f32 %v1162_v7, %v295_v58 }
  0xcf   : > { %v240_v62 = vpop.xlane.xlu0 %239  ;;  %v242_v63 = vpop.xlane.xlu1 %241 }
  0xd0   : > { %v296_v0 = vmul.f32 0.0078125, %v240_v62  ;;  %v358_v1 = vmul.f32 %v1291_v59, %v1291_v59  ;;  %v297_v2 = vmul.f32 0.0078125, %v242_v63  ;;  %v359_v5 = vmul.f32 %v1294_v60, %v1294_v60 }
  0xd2   : > { %v1301_v3 = vsub.f32 %v1167_v8, %v296_v0  ;;  %394 = vadd.xlane.f32.xlu1 %v357_v61  ;;  %396 = vadd.xlane.f32.xlu0 %v358_v1  ;;  %v1304_v4 = vsub.f32 %v1170_v9, %v297_v2 }
  0xd3   : > { %v244_v6 = vpop.xlane.xlu0 %243  ;;  %v246_v7 = vpop.xlane.xlu1 %245 }
  0xd4   : > { %v298_v32 = vmul.f32 0.0078125, %v244_v6  ;;  %v360_v33 = vmul.f32 %v1301_v3, %v1301_v3  ;;  %v299_v34 = vmul.f32 0.0078125, %v246_v7  ;;  %v361_v9 = vmul.f32 %v1304_v4, %v1304_v4 }
  0xd6   : > { %v1311_v35 = vsub.f32 %v1175_v10, %v298_v32  ;;  %398 = vadd.xlane.f32.xlu1 %v359_v5  ;;  %400 = vadd.xlane.f32.xlu0 %v360_v33  ;;  %v1314_v8 = vsub.f32 %v1178_v11, %v299_v34 }
  0xd7   : > { %v248_v38 = vpop.xlane.xlu0 %247  ;;  %v250_v39 = vpop.xlane.xlu1 %249 }
  0xd8   : > { %v300_v40 = vmul.f32 0.0078125, %v248_v38  ;;  %v362_v41 = vmul.f32 %v1311_v35, %v1311_v35  ;;  %v301_v42 = vmul.f32 0.0078125, %v250_v39  ;;  %v363_v11 = vmul.f32 %v1314_v8, %v1314_v8 }
  0xda   : > { %v1321_v45 = vsub.f32 %v1183_v12, %v300_v40  ;;  %402 = vadd.xlane.f32.xlu1 %v361_v9  ;;  %404 = vadd.xlane.f32.xlu0 %v362_v41  ;;  %v1324_v10 = vsub.f32 %v1186_v13, %v301_v42 }
  0xdb   : > { %v252_v46 = vpop.xlane.xlu0 %251  ;;  %v254_v47 = vpop.xlane.xlu1 %253 }
  0xdc   : > { %v302_v48 = vmul.f32 0.0078125, %v252_v46  ;;  %v364_v49 = vmul.f32 %v1321_v45, %v1321_v45  ;;  %v303_v50 = vmul.f32 0.0078125, %v254_v47  ;;  %v365_v13 = vmul.f32 %v1324_v10, %v1324_v10 }
  0xde   : > { %v1331_v53 = vsub.f32 %v1191_v14, %v302_v48  ;;  %406 = vadd.xlane.f32.xlu1 %v363_v11  ;;  %408 = vadd.xlane.f32.xlu0 %v364_v49  ;;  %v1334_v12 = vsub.f32 %v1194_v15, %v303_v50 }
  0xdf   : > { %v256_v54 = vpop.xlane.xlu0 %255  ;;  %v258_v55 = vpop.xlane.xlu1 %257 }
  0xe0   : > { %v304_v56 = vmul.f32 0.0078125, %v256_v54  ;;  %v366_v57 = vmul.f32 %v1331_v53, %v1331_v53  ;;  %v305_v58 = vmul.f32 0.0078125, %v258_v55  ;;  %v367_v15 = vmul.f32 %v1334_v12, %v1334_v12 }
  0xe2   : > { %v1341_v61 = vsub.f32 %v1199_v16, %v304_v56  ;;  %410 = vadd.xlane.f32.xlu1 %v365_v13  ;;  %412 = vadd.xlane.f32.xlu0 %v366_v57  ;;  %v1344_v14 = vsub.f32 %v1202_v17, %v305_v58 }
  0xe3   : > { %v260_v62 = vpop.xlane.xlu0 %259  ;;  %v262_v63 = vpop.xlane.xlu1 %261 }
  0xe4   : > { %v306_v0 = vmul.f32 0.0078125, %v260_v62  ;;  %v368_v1 = vmul.f32 %v1341_v61, %v1341_v61  ;;  %v307_v2 = vmul.f32 0.0078125, %v262_v63  ;;  %v369_v17 = vmul.f32 %v1344_v14, %v1344_v14 }
  0xe6   : > { %v1351_v5 = vsub.f32 %v1207_v18, %v306_v0  ;;  %414 = vadd.xlane.f32.xlu1 %v367_v15  ;;  %416 = vadd.xlane.f32.xlu0 %v368_v1  ;;  %v1354_v16 = vsub.f32 %v1210_v19, %v307_v2 }
  0xe7   : > { %v264_v6 = vpop.xlane.xlu0 %263  ;;  %v266_v7 = vpop.xlane.xlu1 %265 }
  0xe8   : > { %v308_v32 = vmul.f32 0.0078125, %v264_v6  ;;  %v370_v33 = vmul.f32 %v1351_v5, %v1351_v5  ;;  %v309_v34 = vmul.f32 0.0078125, %v266_v7  ;;  %v371_v19 = vmul.f32 %v1354_v16, %v1354_v16 }
  0xea   : > { %v1361_v9 = vsub.f32 %v1215_v20, %v308_v32  ;;  %418 = vadd.xlane.f32.xlu1 %v369_v17  ;;  %420 = vadd.xlane.f32.xlu0 %v370_v33  ;;  %v1364_v18 = vsub.f32 %v1218_v21, %v309_v34 }
  0xeb   : > { %v268_v38 = vpop.xlane.xlu0 %267  ;;  %v270_v39 = vpop.xlane.xlu1 %269 }
  0xec   : > { %v310_v40 = vmul.f32 0.0078125, %v268_v38  ;;  %v372_v41 = vmul.f32 %v1361_v9, %v1361_v9  ;;  %v311_v42 = vmul.f32 0.0078125, %v270_v39  ;;  %v373_v21 = vmul.f32 %v1364_v18, %v1364_v18 }
  0xee   : > { %v1371_v11 = vsub.f32 %v1223_v22, %v310_v40  ;;  %422 = vadd.xlane.f32.xlu1 %v371_v19  ;;  %424 = vadd.xlane.f32.xlu0 %v372_v41  ;;  %v1374_v20 = vsub.f32 %v1226_v23, %v311_v42 }
  0xef   : > { %v272_v46 = vpop.xlane.xlu0 %271  ;;  %v274_v47 = vpop.xlane.xlu1 %273 }
  0xf0   : > { %v312_v48 = vmul.f32 0.0078125, %v272_v46  ;;  %v374_v49 = vmul.f32 %v1371_v11, %v1371_v11  ;;  %v313_v50 = vmul.f32 0.0078125, %v274_v47  ;;  %v375_v23 = vmul.f32 %v1374_v20, %v1374_v20 }
  0xf2   : > { %v1381_v13 = vsub.f32 %v1231_v24, %v312_v48  ;;  %426 = vadd.xlane.f32.xlu1 %v373_v21  ;;  %428 = vadd.xlane.f32.xlu0 %v374_v49  ;;  %v1384_v22 = vsub.f32 %v1234_v25, %v313_v50 }
  0xf3   : > { %v276_v54 = vpop.xlane.xlu0 %275  ;;  %v278_v55 = vpop.xlane.xlu1 %277 }
  0xf4   : > { %v314_v56 = vmul.f32 0.0078125, %v276_v54  ;;  %v376_v57 = vmul.f32 %v1381_v13, %v1381_v13  ;;  %v315_v58 = vmul.f32 0.0078125, %v278_v55  ;;  %v377_v25 = vmul.f32 %v1384_v22, %v1384_v22 }
  0xf6   : > { %v1391_v15 = vsub.f32 %v1239_v26, %v314_v56  ;;  %430 = vadd.xlane.f32.xlu1 %v375_v23  ;;  %432 = vadd.xlane.f32.xlu0 %v376_v57  ;;  %v1394_v24 = vsub.f32 %v1242_v27, %v315_v58 }
  0xf7   : > { %v280_v62 = vpop.xlane.xlu0 %279  ;;  %v282_v63 = vpop.xlane.xlu1 %281 }
  0xf8   : > { %v316_v0 = vmul.f32 0.0078125, %v280_v62  ;;  %v378_v1 = vmul.f32 %v1391_v15, %v1391_v15  ;;  %v317_v2 = vmul.f32 0.0078125, %v282_v63  ;;  %v379_v27 = vmul.f32 %v1394_v24, %v1394_v24 }
  0xfa   : > { %v1401_v17 = vsub.f32 %v1247_v28, %v316_v0  ;;  %434 = vadd.xlane.f32.xlu1 %v377_v25  ;;  %436 = vadd.xlane.f32.xlu0 %v378_v1  ;;  %v1404_v26 = vsub.f32 %v1250_v29, %v317_v2 }
  0xfb   : > { %v284_v6 = vpop.xlane.xlu0 %283  ;;  %v286_v7 = vpop.xlane.xlu1 %285 }
  0xfc   : > { %v318_v32 = vmul.f32 0.0078125, %v284_v6  ;;  %v380_v33 = vmul.f32 %v1401_v17, %v1401_v17  ;;  %v319_v34 = vmul.f32 0.0078125, %v286_v7  ;;  %v381_v29 = vmul.f32 %v1404_v26, %v1404_v26 }
  0xfe   : > { %v1411_v19 = vsub.f32 %v1255_v30, %v318_v32  ;;  %438 = vadd.xlane.f32.xlu1 %v379_v27  ;;  %440 = vadd.xlane.f32.xlu0 %v380_v33  ;;  %v1414_v28 = vsub.f32 %v1258_v31, %v319_v34  ;;  %v1425_v32 = vld [vmem:[%s1615_s1] ss:$0 sm:$0xff] }
 0x100   : > { %v382_v38 = vmul.f32 %v1411_v19, %v1411_v19  ;;  %v383_v39 = vmul.f32 %v1414_v28, %v1414_v28 }
 0x102   : > { %442 = vadd.xlane.f32.xlu1 %v381_v29  ;;  %444 = vadd.xlane.f32.xlu0 %v382_v38  ;;  %v1431_v38 = vld [vmem:[%s1616_s2] ss:$0 sm:$0xff] }
 0x106   : > { %446 = vadd.xlane.f32.xlu1 %v383_v39 }
 0x14f   : > { %v385_v40 = vpop.xlane.xlu0 %384 }
 0x150   : > { %v448_v30 = vmul.f32 0.0078125, %v385_v40 }
 0x152   : > { %v480_v41 = vadd.f32 1e-05, %v448_v30 }
 0x153   : > { %v387_v42 = vpop.xlane.xlu1 %386  ;;  %v389_v21 = vpop.xlane.xlu0 %388 }
 0x154   : > { %841 = vrsqrt.f32 %v480_v41  ;;  %v449_v31 = vmul.f32 0.0078125, %v387_v42  ;;  %v450_v46 = vmul.f32 0.0078125, %v389_v21 }
 0x156   : > { %v481_v47 = vadd.f32 1e-05, %v449_v31  ;;  %v482_v48 = vadd.f32 1e-05, %v450_v46 }
 0x157   : > { %v391_v49 = vpop.xlane.xlu1 %390  ;;  %v393_v50 = vpop.xlane.xlu0 %392 }
 0x158   : > { %843 = vrsqrt.f32 %v481_v47  ;;  %v451_v23 = vmul.f32 0.0078125, %v391_v49  ;;  %v452_v54 = vmul.f32 0.0078125, %v393_v50 }
 0x159   : > { %845 = vrsqrt.f32 %v482_v48 }
 0x15a   : > { %v483_v55 = vadd.f32 1e-05, %v451_v23  ;;  %v484_v56 = vadd.f32 1e-05, %v452_v54 }
 0x15b   : > { %v395_v57 = vpop.xlane.xlu1 %394  ;;  %v397_v58 = vpop.xlane.xlu0 %396 }
 0x15c   : > { %847 = vrsqrt.f32 %v483_v55  ;;  %v453_v25 = vmul.f32 0.0078125, %v395_v57  ;;  %v454_v62 = vmul.f32 0.0078125, %v397_v58 }
 0x15d   : > { %849 = vrsqrt.f32 %v484_v56 }
 0x15e   : > { %v485_v63 = vadd.f32 1e-05, %v453_v25  ;;  %v486_v0 = vadd.f32 1e-05, %v454_v62 }
 0x15f   : > { %v399_v1 = vpop.xlane.xlu1 %398  ;;  %v401_v2 = vpop.xlane.xlu0 %400 }
 0x160   : > { %851 = vrsqrt.f32 %v485_v63  ;;  %v455_v27 = vmul.f32 0.0078125, %v399_v1  ;;  %v456_v6 = vmul.f32 0.0078125, %v401_v2 }
 0x161   : > { %v842_v7 = vpop.eup %841  ;;  %853 = vrsqrt.f32 %v486_v0 }
 0x162   : > { %v546_v33 = vmul.f32 %v842_v7, %v1263_v36  ;;  %v487_v34 = vadd.f32 1e-05, %v455_v27  ;;  %v488_v29 = vadd.f32 1e-05, %v456_v6 }
 0x163   : > { %v403_v39 = vpop.xlane.xlu1 %402  ;;  %v405_v40 = vpop.xlane.xlu0 %404 }
 0x164   : > { %v584_v30 = vmul.f32 %v1425_v32, %v546_v33  ;;  %855 = vrsqrt.f32 %v487_v34  ;;  %v457_v41 = vmul.f32 0.0078125, %v403_v39  ;;  %v458_v42 = vmul.f32 0.0078125, %v405_v40 }
 0x165   : > { %v844_v21 = vpop.eup %843  ;;  %857 = vrsqrt.f32 %v488_v29 }
 0x166   : > { %v846_v31 = vpop.eup %845  ;;  %v622_v36 = vadd.f32 %v1431_v38, %v584_v30  ;;  %v547_v46 = vmul.f32 %v844_v21, %v1271_v43  ;;  %v489_v47 = vadd.f32 1e-05, %v457_v41  ;;  %v490_v48 = vadd.f32 1e-05, %v458_v42 }
 0x167   : > { %v548_v49 = vmul.f32 %v846_v31, %v1266_v37  ;;  %v407_v50 = vpop.xlane.xlu1 %406  ;;  %v409_v23 = vpop.xlane.xlu0 %408 }
 0x168   : > { %654 = vst [vmem:[%s1439_s8] sm:$0xff] %v622_v36  ;;  %v585_v54 = vmul.f32 %v1425_v32, %v547_v46  ;;  %859 = vrsqrt.f32 %v489_v47  ;;  %v459_v55 = vmul.f32 0.0078125, %v407_v50  ;;  %v460_v56 = vmul.f32 0.0078125, %v409_v23 }
 0x169   : > { %v848_v57 = vpop.eup %847  ;;  %v586_v43 = vmul.f32 %v1425_v32, %v548_v49  ;;  %861 = vrsqrt.f32 %v490_v48 }
 0x16a   : > { %v850_v58 = vpop.eup %849  ;;  %v623_v37 = vadd.f32 %v1431_v38, %v585_v54  ;;  %v549_v25 = vmul.f32 %v848_v57, %v1274_v44  ;;  %v491_v62 = vadd.f32 1e-05, %v459_v55  ;;  %v492_v63 = vadd.f32 1e-05, %v460_v56 }
 0x16b   : > { %v624_v0 = vadd.f32 %v1431_v38, %v586_v43  ;;  %v550_v1 = vmul.f32 %v850_v58, %v1281_v51  ;;  %v411_v2 = vpop.xlane.xlu1 %410  ;;  %v413_v27 = vpop.xlane.xlu0 %412 }
 0x16c   : > { %655 = vst [vmem:[%s1439_s8 + $0x8] sm:$0xff] %v623_v37  ;;  %v587_v6 = vmul.f32 %v1425_v32, %v549_v25  ;;  %863 = vrsqrt.f32 %v491_v62  ;;  %v461_v7 = vmul.f32 0.0078125, %v411_v2  ;;  %v462_v33 = vmul.f32 0.0078125, %v413_v27 }
 0x16d   : > { %v852_v34 = vpop.eup %851  ;;  %656 = vst [vmem:[%s1439_s8 + $0x10] sm:$0xff] %v624_v0  ;;  %v588_v29 = vmul.f32 %v1425_v32, %v550_v1  ;;  %865 = vrsqrt.f32 %v492_v63 }
 0x16e   : > { %v854_v44 = vpop.eup %853  ;;  %v625_v39 = vadd.f32 %v1431_v38, %v587_v6  ;;  %v551_v51 = vmul.f32 %v852_v34, %v1284_v52  ;;  %v493_v40 = vadd.f32 1e-05, %v461_v7  ;;  %v494_v30 = vadd.f32 1e-05, %v462_v33 }
 0x16f   : > { %v626_v41 = vadd.f32 %v1431_v38, %v588_v29  ;;  %v552_v42 = vmul.f32 %v854_v44, %v1291_v59  ;;  %v415_v21 = vpop.xlane.xlu1 %414  ;;  %v417_v31 = vpop.xlane.xlu0 %416 }
 0x170   : > { %657 = vst [vmem:[%s1439_s8 + $0x18] sm:$0xff] %v625_v39  ;;  %v589_v36 = vmul.f32 %v1425_v32, %v551_v51  ;;  %867 = vrsqrt.f32 %v493_v40  ;;  %v463_v46 = vmul.f32 0.0078125, %v415_v21  ;;  %v464_v47 = vmul.f32 0.0078125, %v417_v31 }
 0x171   : > { %v856_v48 = vpop.eup %855  ;;  %658 = vst [vmem:[%s1439_s8 + $0x20] sm:$0xff] %v626_v41  ;;  %v590_v49 = vmul.f32 %v1425_v32, %v552_v42  ;;  %869 = vrsqrt.f32 %v494_v30 }
 0x172   : > { %v858_v52 = vpop.eup %857  ;;  %v627_v50 = vadd.f32 %v1431_v38, %v589_v36  ;;  %v553_v59 = vmul.f32 %v856_v48, %v1294_v60  ;;  %v495_v23 = vadd.f32 1e-05, %v463_v46  ;;  %v496_v54 = vadd.f32 1e-05, %v464_v47 }
 0x173   : > { %v628_v55 = vadd.f32 %v1431_v38, %v590_v49  ;;  %v554_v56 = vmul.f32 %v858_v52, %v1301_v3  ;;  %v419_v57 = vpop.xlane.xlu1 %418  ;;  %v421_v43 = vpop.xlane.xlu0 %420 }
 0x174   : > { %659 = vst [vmem:[%s1439_s8 + $0x28] sm:$0xff] %v627_v50  ;;  %v591_v58 = vmul.f32 %v1425_v32, %v553_v59  ;;  %871 = vrsqrt.f32 %v495_v23  ;;  %v465_v37 = vmul.f32 0.0078125, %v419_v57  ;;  %v466_v25 = vmul.f32 0.0078125, %v421_v43 }
 0x175   : > { %v860_v62 = vpop.eup %859  ;;  %660 = vst [vmem:[%s1439_s8 + $0x30] sm:$0xff] %v628_v55  ;;  %v592_v63 = vmul.f32 %v1425_v32, %v554_v56  ;;  %873 = vrsqrt.f32 %v496_v54 }
 0x176   : > { %v862_v60 = vpop.eup %861  ;;  %v629_v0 = vadd.f32 %v1431_v38, %v591_v58  ;;  %v555_v3 = vmul.f32 %v860_v62, %v1304_v4  ;;  %v497_v1 = vadd.f32 1e-05, %v465_v37  ;;  %v498_v2 = vadd.f32 1e-05, %v466_v25 }
 0x177   : > { %v630_v27 = vadd.f32 %v1431_v38, %v592_v63  ;;  %v556_v6 = vmul.f32 %v862_v60, %v1311_v35  ;;  %v423_v7 = vpop.xlane.xlu1 %422  ;;  %v425_v33 = vpop.xlane.xlu0 %424 }
 0x178   : > { %661 = vst [vmem:[%s1439_s8 + $0x38] sm:$0xff] %v629_v0  ;;  %v593_v34 = vmul.f32 %v1425_v32, %v555_v3  ;;  %875 = vrsqrt.f32 %v497_v1  ;;  %v467_v29 = vmul.f32 0.0078125, %v423_v7  ;;  %v468_v44 = vmul.f32 0.0078125, %v425_v33 }
 0x179   : > { %v864_v39 = vpop.eup %863  ;;  %662 = vst [vmem:[%s1439_s8 + $0x40] sm:$0xff] %v630_v27  ;;  %v594_v51 = vmul.f32 %v1425_v32, %v556_v6  ;;  %877 = vrsqrt.f32 %v498_v2 }
 0x17a   : > { %v866_v4 = vpop.eup %865  ;;  %v631_v40 = vadd.f32 %v1431_v38, %v593_v34  ;;  %v557_v35 = vmul.f32 %v864_v39, %v1314_v8  ;;  %v499_v30 = vadd.f32 1e-05, %v467_v29  ;;  %v500_v41 = vadd.f32 1e-05, %v468_v44 }
 0x17b   : > { %v632_v42 = vadd.f32 %v1431_v38, %v594_v51  ;;  %v558_v21 = vmul.f32 %v866_v4, %v1321_v45  ;;  %v427_v31 = vpop.xlane.xlu1 %426  ;;  %v429_v36 = vpop.xlane.xlu0 %428 }
 0x17c   : > { %663 = vst [vmem:[%s1439_s8 + $0x48] sm:$0xff] %v631_v40  ;;  %v595_v46 = vmul.f32 %v1425_v32, %v557_v35  ;;  %879 = vrsqrt.f32 %v499_v30  ;;  %v469_v47 = vmul.f32 0.0078125, %v427_v31  ;;  %v470_v48 = vmul.f32 0.0078125, %v429_v36 }
 0x17d   : > { %v868_v49 = vpop.eup %867  ;;  %664 = vst [vmem:[%s1439_s8 + $0x50] sm:$0xff] %v632_v42  ;;  %v596_v52 = vmul.f32 %v1425_v32, %v558_v21  ;;  %881 = vrsqrt.f32 %v500_v41 }
 0x17e   : > { %v870_v8 = vpop.eup %869  ;;  %v633_v50 = vadd.f32 %v1431_v38, %v595_v46  ;;  %v559_v45 = vmul.f32 %v868_v49, %v1324_v10  ;;  %v501_v59 = vadd.f32 1e-05, %v469_v47  ;;  %v502_v23 = vadd.f32 1e-05, %v470_v48 }
 0x17f   : > { %v634_v54 = vadd.f32 %v1431_v38, %v596_v52  ;;  %v560_v55 = vmul.f32 %v870_v8, %v1331_v53  ;;  %v431_v56 = vpop.xlane.xlu1 %430  ;;  %v433_v57 = vpop.xlane.xlu0 %432 }
 0x180   : > { %665 = vst [vmem:[%s1439_s8 + $0x58] sm:$0xff] %v633_v50  ;;  %v597_v43 = vmul.f32 %v1425_v32, %v559_v45  ;;  %883 = vrsqrt.f32 %v501_v59  ;;  %v471_v58 = vmul.f32 0.0078125, %v431_v56  ;;  %v472_v37 = vmul.f32 0.0078125, %v433_v57 }
 0x181   : > { %v872_v25 = vpop.eup %871  ;;  %666 = vst [vmem:[%s1439_s8 + $0x60] sm:$0xff] %v634_v54  ;;  %v598_v62 = vmul.f32 %v1425_v32, %v560_v55  ;;  %885 = vrsqrt.f32 %v502_v23 }
 0x182   : > { %v874_v10 = vpop.eup %873  ;;  %v635_v63 = vadd.f32 %v1431_v38, %v597_v43  ;;  %v561_v53 = vmul.f32 %v872_v25, %v1334_v12  ;;  %v503_v60 = vadd.f32 1e-05, %v471_v58  ;;  %v504_v0 = vadd.f32 1e-05, %v472_v37 }
 0x183   : > { %v636_v3 = vadd.f32 %v1431_v38, %v598_v62  ;;  %v562_v1 = vmul.f32 %v874_v10, %v1341_v61  ;;  %v435_v2 = vpop.xlane.xlu1 %434  ;;  %v437_v27 = vpop.xlane.xlu0 %436 }
 0x184   : > { %667 = vst [vmem:[%s1439_s8 + $0x68] sm:$0xff] %v635_v63  ;;  %v599_v6 = vmul.f32 %v1425_v32, %v561_v53  ;;  %887 = vrsqrt.f32 %v503_v60  ;;  %v473_v7 = vmul.f32 0.0078125, %v435_v2  ;;  %v474_v33 = vmul.f32 0.0078125, %v437_v27 }
 0x185   : > { %v876_v34 = vpop.eup %875  ;;  %668 = vst [vmem:[%s1439_s8 + $0x70] sm:$0xff] %v636_v3  ;;  %v600_v29 = vmul.f32 %v1425_v32, %v562_v1  ;;  %889 = vrsqrt.f32 %v504_v0 }
 0x186   : > { %v878_v12 = vpop.eup %877  ;;  %v637_v44 = vadd.f32 %v1431_v38, %v599_v6  ;;  %v563_v61 = vmul.f32 %v876_v34, %v1344_v14  ;;  %v505_v39 = vadd.f32 1e-05, %v473_v7  ;;  %v506_v51 = vadd.f32 1e-05, %v474_v33 }
 0x187   : > { %v638_v4 = vadd.f32 %v1431_v38, %v600_v29  ;;  %v564_v40 = vmul.f32 %v878_v12, %v1351_v5  ;;  %v439_v35 = vpop.xlane.xlu1 %438  ;;  %v441_v30 = vpop.xlane.xlu0 %440 }
 0x188   : > { %669 = vst [vmem:[%s1439_s8 + $0x78] sm:$0xff] %v637_v44  ;;  %v601_v41 = vmul.f32 %v1425_v32, %v563_v61  ;;  %891 = vrsqrt.f32 %v505_v39  ;;  %v475_v42 = vmul.f32 0.0078125, %v439_v35  ;;  %v476_v21 = vmul.f32 0.0078125, %v441_v30 }
 0x189   : > { %v880_v31 = vpop.eup %879  ;;  %670 = vst [vmem:[%s1439_s8 + $0x80] sm:$0xff] %v638_v4  ;;  %v602_v36 = vmul.f32 %v1425_v32, %v564_v40  ;;  %893 = vrsqrt.f32 %v506_v51 }
 0x18a   : > { %v882_v14 = vpop.eup %881  ;;  %v639_v46 = vadd.f32 %v1431_v38, %v601_v41  ;;  %v565_v5 = vmul.f32 %v880_v31, %v1354_v16  ;;  %v507_v47 = vadd.f32 1e-05, %v475_v42  ;;  %v508_v48 = vadd.f32 1e-05, %v476_v21 }
 0x18b   : > { %v640_v49 = vadd.f32 %v1431_v38, %v602_v36  ;;  %v566_v52 = vmul.f32 %v882_v14, %v1361_v9  ;;  %v443_v8 = vpop.xlane.xlu1 %442  ;;  %v445_v50 = vpop.xlane.xlu0 %444 }
 0x18c   : > { %671 = vst [vmem:[%s1439_s8 + $0x88] sm:$0xff] %v639_v46  ;;  %v603_v45 = vmul.f32 %v1425_v32, %v565_v5  ;;  %895 = vrsqrt.f32 %v507_v47  ;;  %v477_v59 = vmul.f32 0.0078125, %v443_v8  ;;  %v478_v23 = vmul.f32 0.0078125, %v445_v50 }
 0x18d   : > { %v884_v54 = vpop.eup %883  ;;  %672 = vst [vmem:[%s1439_s8 + $0x90] sm:$0xff] %v640_v49  ;;  %v604_v16 = vmul.f32 %v1425_v32, %v566_v52  ;;  %897 = vrsqrt.f32 %v508_v48 }
 0x18e   : > { %v886_v55 = vpop.eup %885  ;;  %v641_v56 = vadd.f32 %v1431_v38, %v603_v45  ;;  %v567_v9 = vmul.f32 %v884_v54, %v1364_v18  ;;  %v509_v57 = vadd.f32 1e-05, %v477_v59  ;;  %v510_v43 = vadd.f32 1e-05, %v478_v23 }
 0x18f   : > { %v642_v58 = vadd.f32 %v1431_v38, %v604_v16  ;;  %v568_v37 = vmul.f32 %v886_v55, %v1371_v11  ;;  %v447_v25 = vpop.xlane.xlu1 %446 }
 0x190   : > { %673 = vst [vmem:[%s1439_s8 + $0x98] sm:$0xff] %v641_v56  ;;  %v605_v62 = vmul.f32 %v1425_v32, %v567_v9  ;;  %899 = vrsqrt.f32 %v509_v57  ;;  %v479_v10 = vmul.f32 0.0078125, %v447_v25 }
 0x191   : > { %v888_v63 = vpop.eup %887  ;;  %674 = vst [vmem:[%s1439_s8 + $0xa0] sm:$0xff] %v642_v58  ;;  %v606_v53 = vmul.f32 %v1425_v32, %v568_v37  ;;  %901 = vrsqrt.f32 %v510_v43 }
 0x192   : > { %v890_v18 = vpop.eup %889  ;;  %v643_v60 = vadd.f32 %v1431_v38, %v605_v62  ;;  %v569_v0 = vmul.f32 %v888_v63, %v1374_v20  ;;  %v511_v11 = vadd.f32 1e-05, %v479_v10 }
 0x193   : > { %v644_v3 = vadd.f32 %v1431_v38, %v606_v53  ;;  %v570_v1 = vmul.f32 %v890_v18, %v1381_v13 }
 0x194   : > { %675 = vst [vmem:[%s1439_s8 + $0xa8] sm:$0xff] %v643_v60  ;;  %v607_v2 = vmul.f32 %v1425_v32, %v569_v0  ;;  %903 = vrsqrt.f32 %v511_v11 }
 0x195   : > { %v892_v27 = vpop.eup %891  ;;  %676 = vst [vmem:[%s1439_s8 + $0xb0] sm:$0xff] %v644_v3  ;;  %v608_v6 = vmul.f32 %v1425_v32, %v570_v1 }
 0x196   : > { %v894_v7 = vpop.eup %893  ;;  %v645_v33 = vadd.f32 %v1431_v38, %v607_v2  ;;  %v571_v20 = vmul.f32 %v892_v27, %v1384_v22 }
 0x197   : > { %v646_v34 = vadd.f32 %v1431_v38, %v608_v6  ;;  %v572_v29 = vmul.f32 %v894_v7, %v1391_v15 }
 0x198   : > { %677 = vst [vmem:[%s1439_s8 + $0xb8] sm:$0xff] %v645_v33  ;;  %v609_v13 = vmul.f32 %v1425_v32, %v571_v20 }
 0x199   : > { %v896_v12 = vpop.eup %895  ;;  %678 = vst [vmem:[%s1439_s8 + $0xc0] sm:$0xff] %v646_v34  ;;  %v610_v44 = vmul.f32 %v1425_v32, %v572_v29 }
 0x19a   : > { %v898_v61 = vpop.eup %897  ;;  %v647_v39 = vadd.f32 %v1431_v38, %v609_v13  ;;  %v573_v51 = vmul.f32 %v896_v12, %v1394_v24 }
 0x19b   : > { %v648_v22 = vadd.f32 %v1431_v38, %v610_v44  ;;  %v574_v4 = vmul.f32 %v898_v61, %v1401_v17 }
 0x19c   : > { %679 = vst [vmem:[%s1439_s8 + $0xc8] sm:$0xff] %v647_v39  ;;  %v611_v15 = vmul.f32 %v1425_v32, %v573_v51 }
 0x19d   : > { %v900_v40 = vpop.eup %899  ;;  %680 = vst [vmem:[%s1439_s8 + $0xd0] sm:$0xff] %v648_v22  ;;  %v612_v35 = vmul.f32 %v1425_v32, %v574_v4 }
 0x19e   : > { %v902_v30 = vpop.eup %901  ;;  %v649_v41 = vadd.f32 %v1431_v38, %v611_v15  ;;  %v575_v24 = vmul.f32 %v900_v40, %v1404_v26 }
 0x19f   : > { %v650_v42 = vadd.f32 %v1431_v38, %v612_v35  ;;  %v576_v17 = vmul.f32 %v902_v30, %v1411_v19 }
 0x1a0   : > { %681 = vst [vmem:[%s1439_s8 + $0xd8] sm:$0xff] %v649_v41  ;;  %v613_v21 = vmul.f32 %v1425_v32, %v575_v24 }
 0x1a1   : > { %v904_v31 = vpop.eup %903  ;;  %682 = vst [vmem:[%s1439_s8 + $0xe0] sm:$0xff] %v650_v42  ;;  %v614_v36 = vmul.f32 %v1425_v32, %v576_v17 }
 0x1a2   : > { %v651_v14 = vadd.f32 %v1431_v38, %v613_v21  ;;  %v577_v46 = vmul.f32 %v904_v31, %v1414_v28 }
 0x1a3   : > { %v652_v26 = vadd.f32 %v1431_v38, %v614_v36 }
 0x1a4   : > { %683 = vst [vmem:[%s1439_s8 + $0xe8] sm:$0xff] %v651_v14  ;;  %v615_v19 = vmul.f32 %v1425_v32, %v577_v46 }
 0x1a5   : > { %684 = vst [vmem:[%s1439_s8 + $0xf0] sm:$0xff] %v652_v26 }
 0x1a6   : > { %v653_v28 = vadd.f32 %v1431_v38, %v615_v19 }
 0x1a8   : > { %685 = vst [vmem:[%s1439_s8 + $0xf8] sm:$0xff] %v653_v28 }
 0x1a9   : > { %946 = shalt.err (!%p943_p10)
}
 0x1aa   : > { %s947_s9 = scalar_lea.hbm %s1567_s26, 4096  ;;  %s951_s23 = scalar_lea.hbm %s1617_s3, 8192 }
 0x1ab   : > { %p948_p0 = scmp.ne.s32.totalorder %s1567_s26, %s947_s9  ;;  %p952_p1 = scmp.lt.s32.totalorder %s1567_s26, %s1617_s3 }
 0x1ac   : > { %p953_p3 = scmp.lt.s32.totalorder %s951_s23, %s947_s9 }
 0x1ad   : > { %p949_p2 = pnand %p948_p0, %p1626_p12 }
 0x1ae   : > { %p954_p6 = por %p953_p3, %p952_p1 }
 0x1af   : > { %p950_p9 = pneg %p949_p2 }
 0x1b1   : > { %p955_p11 = pnand %p954_p6, %p950_p9 }
 0x1b3   : > { %958 = shalt.err (!%p955_p11)
}
 0x1b4   : > { %s1003_s7 = smov 128   ;;  %s1004_s8 = smov 8  }
 0x1b5   : > { %793 = dma.vmem_to_hbm [thread:$0]  (%p1626_p12), %s1569_s19, 4096, %s1567_s26, %s687_s16, %s1003_s7, %s1003_s7, %s1004_s8  }
 0x1b6 PF: > { %s715_s17 = sand.u32 1, %s985_s12   ;;  %p1627_p13 = scmp.ne.s32.totalorder %s1623_s25, 0 }
 0x1b7   : > { %p1628_p4 = scmp.ge.s32.totalorder %s997_s15, 2  ;;  %s716_s20 = scalar_lea.sflag [#allocation4], %s715_s17 }
 0x1b9   : > { %p800_p5 = pnand %p1628_p4, %p1627_p13 }
 0x1bb   : > { %p801_p7 = pneg %p800_p5 }
 0x1bd   : > { %980 = dma.done.wait (%p801_p7), %s716_s20, 4096  }
 0x1be   : > { %982 = vsyncadd (%p801_p7), %s716_s20, 4294963200  ;;  %p16_p8 = scmp.ge.s32.totalorder %s1050_s18, 4   ;;  %s1629_s12 = smov %s989_s13 }
 0x1bf   : > { %s1630_s13 = smov %s993_s14  ;;  %s1631_s14 = smov %s1062_s21 }
 0x1c0   : > { %s1632_s15 = smov %s1050_s18  ;;  %18 = sbr.rel (!%p16_p8) target bundleno = 5 (0x5), region = 77 }
 0x1c5   :  { %721 = vsyncpa [#allocation3], 1 }
 0x1c6   :  { %723 = vsyncpa [#allocation3 + $0x1], 1 }
 0x1c7   :  { %724 = vsyncpa [#allocation4], 1 }
 0x1c8   :  { %726 = vsyncpa [#allocation4 + $0x1], 1 }

</bundles_post_ra>
